<compile_context>
chip_gen: v6e
topology: v6e:2x2x1
jax: 0.10.0
libtpu: 0.0.40
codegen_flags: <defaults>
</compile_context>

<pallas_src>
import functools

import jax
import jax.numpy as jnp
import numpy as np
from jax import lax
from jax.experimental import pallas as pl
from jax.experimental.pallas import tpu as pltpu


def _round_up(x, m):
    return ((x + m - 1) // m) * m


@functools.lru_cache(maxsize=1)
def _vmem_budget_bytes():
    """Generation-aware VMEM budget: ~75% of physical, 48 MiB fallback."""
    try:
        cap = getattr(pltpu.get_tpu_info(), "vmem_capacity_bytes", None)
        if cap:
            return int(cap) * 3 // 4      # v5e/v6e: ~96 MiB, v7x: ~48 MiB
    except Exception:
        pass
    return 48 * 1024 * 1024


def _choose_tk(n, m, itemsize, budget_bytes):
    """Pick contraction-tile width TK (multiple of 128).

    Sized so that (a) 2 inputs x 2 pipeline buffers x (N, TK) plus the single
    (N, N) f32 difference accumulator fit the budget, and (b) the grid keeps
    >= ~4 steps once M is large enough (floor of 512 lanes) so double-buffering
    hides the HBM DMA under the MXU work.
    """
    m_pad = _round_up(max(m, 1), 128)
    n_pad = _round_up(max(n, 1), 8)
    acc_bytes = n_pad * _round_up(n, 128) * 4     # one (N, N) f32 accumulator
    headroom = 2 << 20
    avail = budget_bytes - acc_bytes - headroom
    if avail <= 0:
        tk_budget = 128
    else:
        tk_budget = max(128, (avail // (4 * n_pad * itemsize)) // 128 * 128)
    tk_pipeline = max(512, ((m_pad // 4) // 128) * 128)   # aim for >= 4 steps
    return max(128, min(tk_budget, tk_pipeline, m_pad))


def _style_layer_kernel(f1_ref, f2_ref, o_ref, acc_ref, *,
                        final_scale, m_total, tile_k, ragged):
    """Accumulates gram(F1) - gram(F2) over the spatial tiles of one layer.

    f1_ref, f2_ref: (N, TK) feature tiles (N = a*b, TK = spatial tile width).
    o_ref:          (1, 1) f32 scalar result in SMEM (written on last step).
    acc_ref:        (N, N) f32 VMEM accumulator holding un-normalized G1 - G2.
    """
    k = pl.program_id(0)

    @pl.when(k == 0)
    def _():
        acc_ref[...] = jnp.zeros_like(acc_ref)

    f1 = f1_ref[...]
    f2 = f2_ref[...]

    if ragged:
        # The last tile runs past M; Pallas does NOT guarantee zeros in the
        # out-of-bounds block region, so zero the invalid lanes. Both operands
        # are masked so even NaN/Inf garbage cannot leak through 0 * Inf.
        valid = m_total - k * tile_k
        lane = lax.broadcasted_iota(jnp.int32, f1.shape, dimension=1)
        keep = lane < valid
        f1 = jnp.where(keep, f1, jnp.zeros_like(f1))
        f2 = jnp.where(keep, f2, jnp.zeros_like(f2))

    # Contract both operands on their last (lane) axis -> F @ F^T fed to the
    # MXU without materializing a transpose through the XLU.
    dn = (((1,), (1,)), ((), ()))
    g1 = lax.dot_general(f1, f1, dimension_numbers=dn,
                         preferred_element_type=jnp.float32)
    g2 = lax.dot_general(f2, f2, dimension_numbers=dn,
                         preferred_element_type=jnp.float32)
    acc_ref[...] += g1 - g2          # single accumulator RMW per tile

    @pl.when(k == pl.num_programs(0) - 1)
    def _():
        # 0.5 * mean(|G1 - G2|): gram normalization (1/(a*b*c*d)) and the mean
        # (1/N^2) are folded into one positive scalar applied after the sum.
        o_ref[0, 0] = jnp.sum(jnp.abs(acc_ref[...])) * jnp.float32(final_scale)


def style_loss_layer(x1, x2, tile_k=None):
    """One layer's contribution: 0.5 * mean(|gram(x1) - gram(x2)|)."""
    a, b, c, d = x1.shape
    assert x2.shape == x1.shape
    n, m = a * b, c * d

    # bf16 features already in HBM are fed to the MXU directly (f32 accum);
    # everything else runs the exact-f32 path matching the PyTorch numerics.
    feat_dtype = jnp.bfloat16 if x1.dtype == jnp.bfloat16 else jnp.float32
    f1 = x1.reshape(n, m).astype(feat_dtype)
    f2 = x2.reshape(n, m).astype(feat_dtype)
    itemsize = jnp.dtype(feat_dtype).itemsize

    budget = _vmem_budget_bytes()
    if tile_k is None:
        tk = _choose_tk(n, m, itemsize, budget)
    else:
        tk = min(_round_up(tile_k, 128), _round_up(m, 128))

    n_steps = (m + tk - 1) // tk
    ragged = (m % tk) != 0

    n_pad = _round_up(n, 8)
    acc_bytes = n_pad * _round_up(n, 128) * 4
    vmem_need = 2 * 2 * n_pad * tk * itemsize + acc_bytes
    vmem_limit = int(max(vmem_need + (4 << 20), 16 << 20))

    final_scale = 0.5 / (float(a * b * c * d) * float(n) * float(n))

    kernel = functools.partial(
        _style_layer_kernel,
        final_scale=final_scale, m_total=m, tile_k=tk, ragged=ragged)

    out = pl.pallas_call(
        kernel,
        out_shape=jax.ShapeDtypeStruct((1, 1), jnp.float32),
        grid_spec=pltpu.PrefetchScalarGridSpec(
            num_scalar_prefetch=0,
            grid=(n_steps,),
            in_specs=[
                pl.BlockSpec((n, tk), lambda k: (0, k)),
                pl.BlockSpec((n, tk), lambda k: (0, k)),
            ],
            out_specs=pl.BlockSpec(memory_space=pltpu.SMEM),
            scratch_shapes=[
                pltpu.VMEM((n, n), jnp.float32),
            ],
        ),
        compiler_params=pltpu.CompilerParams(
            dimension_semantics=("arbitrary",),
            vmem_limit_bytes=vmem_limit,
        ),
        cost_estimate=pl.CostEstimate(
            flops=4 * n * n * m,
            transcendentals=0,
            bytes_accessed=2 * n * m * itemsize + 4,
        ),
    )(f1, f2)
    return out[0, 0]


def style_loss(x_vgg1, x_vgg2, lays, tile_k=None):
    """Pallas equivalent of StyleLoss.forward."""
    loss = jnp.float32(0.0)
    for lay in lays:
        loss = loss + style_loss_layer(x_vgg1[lay], x_vgg2[lay], tile_k=tile_k)
    return loss


def _style_loss_ref(x_vgg1, x_vgg2, lays):
    """Pure-JAX reference mirroring the PyTorch module."""
    loss = jnp.float32(0.0)
    for lay in lays:
        x1, x2 = x_vgg1[lay], x_vgg2[lay]
        a, b, c, d = x1.shape
        f1 = x1.reshape(a * b, c * d)
        f2 = x2.reshape(a * b, c * d)
        g1 = (f1 @ f1.T) / (a * b * c * d)
        g2 = (f2 @ f2.T) / (a * b * c * d)
        loss = loss + 0.5 * jnp.mean(jnp.abs(g1 - g2))
    return loss


if __name__ == "__main__":
    key = jax.random.PRNGKey(0)
    keys = jax.random.split(key, 6)

    # Three "VGG layers" of NCHW features. The third has a ragged spatial size
    # (M = 240, not a multiple of 128) to exercise the in-kernel lane mask.
    shapes = [(2, 4, 16, 16), (2, 8, 16, 16), (2, 4, 12, 20)]
    x_vgg1 = [jax.random.normal(keys[i], s, dtype=jnp.float32)
              for i, s in enumerate(shapes)]
    x_vgg2 = [jax.random.normal(keys[3 + i], s, dtype=jnp.float32)
              for i, s in enumerate(shapes)]
    lays = [0, 1, 2]

    ref = jax.block_until_ready(_style_loss_ref(x_vgg1, x_vgg2, lays))

    # Auto-sized tiles (single step at these tiny shapes; ragged mask on lay 2).
    out_auto = jax.block_until_ready(style_loss(x_vgg1, x_vgg2, lays))
    np.testing.assert_allclose(np.asarray(out_auto), np.asarray(ref),
                               rtol=1e-5, atol=1e-6)

    # Forced small tile (tk=128 -> 2 grid steps per layer, ragged last tile on
    # layer 2) to exercise the tiled accumulation / pipelined / masked path.
    out_tiled = jax.block_until_ready(style_loss(x_vgg1, x_vgg2, lays,
                                                 tile_k=128))
    np.testing.assert_allclose(np.asarray(out_tiled), np.asarray(ref),
                               rtol=1e-5, atol=1e-6)

    print("KERNEL_OK")
</pallas_src>

<mosaic_0001>
module attributes {stable_mosaic.version = 11 : i64} {
  func.func @_style_layer_kernel(%arg0: i32, %arg1: memref<8x256xf32, #tpu.memory_space<vmem>>, %arg2: memref<8x256xf32, #tpu.memory_space<vmem>>, %arg3: memref<1x1xf32, #tpu.memory_space<smem>>, %arg4: memref<8x8xf32, #tpu.memory_space<vmem>>) attributes {dimension_semantics = [#tpu.dimension_semantics<arbitrary>], iteration_bounds = array<i64: 1>, scalar_prefetch = 0 : i64, scratch_operands = 1 : i64, tpu.core_type = #tpu.core_type<tc>, window_params = [{transform_indices = @transform_0, window_bounds = array<i64: 8, 256>}, {transform_indices = @transform_1, window_bounds = array<i64: 8, 256>}, {transform_indices = @transform_2, window_bounds = array<i64: 1, 1>}]} {
    %c0_i32 = arith.constant 0 : i32
    %0 = arith.cmpi eq, %arg0, %c0_i32 : i32
    %1 = arith.extui %0 : i1 to i32
    %c0_i32_0 = arith.constant 0 : i32
    %2 = arith.cmpi ne, %1, %c0_i32_0 : i32
    scf.if %2 {
      %cst_11 = arith.constant 0.000000e+00 : f32
      %14 = vector.broadcast %cst_11 : f32 to vector<8x8xf32>
      %c0_12 = arith.constant 0 : index
      %c0_13 = arith.constant 0 : index
      %15 = vector.load %arg4[%c0_12, %c0_13] : memref<8x8xf32, #tpu.memory_space<vmem>>, vector<8x8xf32>
      tpu.vector_store %arg4[%c0_12, %c0_13], %14 {strides = array<i32>} : memref<8x8xf32, #tpu.memory_space<vmem>>, vector<8x8xf32>,
    } else {
    }
    %c0 = arith.constant 0 : index
    %c0_1 = arith.constant 0 : index
    %3 = vector.load %arg1[%c0, %c0_1] : memref<8x256xf32, #tpu.memory_space<vmem>>, vector<8x256xf32>
    %c0_2 = arith.constant 0 : index
    %c0_3 = arith.constant 0 : index
    %4 = vector.load %arg2[%c0_2, %c0_3] : memref<8x256xf32, #tpu.memory_space<vmem>>, vector<8x256xf32>
    %cst = arith.constant dense<0.000000e+00> : vector<8x8xf32>
    %5 = tpu.matmul %3, %3, %cst {dimension_numbers = #tpu.dot_dimension_numbers<[1], [1], [0], [0], [0, 0, 1, 0], [], []>} : vector<8x256xf32>, vector<8x256xf32>, vector<8x8xf32> -> vector<8x8xf32>
    %cst_4 = arith.constant dense<0.000000e+00> : vector<8x8xf32>
    %6 = tpu.matmul %4, %4, %cst_4 {dimension_numbers = #tpu.dot_dimension_numbers<[1], [1], [0], [0], [0, 0, 1, 0], [], []>} : vector<8x256xf32>, vector<8x256xf32>, vector<8x8xf32> -> vector<8x8xf32>
    %c0_5 = arith.constant 0 : index
    %c0_6 = arith.constant 0 : index
    %7 = vector.load %arg4[%c0_5, %c0_6] : memref<8x8xf32, #tpu.memory_space<vmem>>, vector<8x8xf32>
    %8 = arith.subf %5, %6 : vector<8x8xf32>
    %9 = arith.addf %7, %8 : vector<8x8xf32>
    %c0_7 = arith.constant 0 : index
    %c0_8 = arith.constant 0 : index
    %10 = vector.load %arg4[%c0_7, %c0_8] : memref<8x8xf32, #tpu.memory_space<vmem>>, vector<8x8xf32>
    tpu.vector_store %arg4[%c0_7, %c0_8], %9 {strides = array<i32>} : memref<8x8xf32, #tpu.memory_space<vmem>>, vector<8x8xf32>,
    %c0_i32_9 = arith.constant 0 : i32
    %11 = arith.cmpi eq, %arg0, %c0_i32_9 : i32
    %12 = arith.extui %11 : i1 to i32
    %c0_i32_10 = arith.constant 0 : i32
    %13 = arith.cmpi ne, %12, %c0_i32_10 : i32
    scf.if %13 {
      %c0_11 = arith.constant 0 : index
      %c0_12 = arith.constant 0 : index
      %14 = vector.load %arg4[%c0_11, %c0_12] : memref<8x8xf32, #tpu.memory_space<vmem>>, vector<8x8xf32>
      %15 = math.absf %14 : vector<8x8xf32>
      %16 = vector.shape_cast %15 : vector<8x8xf32> to vector<1x8x8xf32>
      %cst_13 = arith.constant dense<0.000000e+00> : vector<1xf32>
      %17 = vector.multi_reduction <add>, %16, %cst_13 [1, 2] : vector<1x8x8xf32> to vector<1xf32>
      %18 = vector.shape_cast %17 : vector<1xf32> to vector<1x1x1xf32>
      %19 = vector.extract %18[0, 0, 0] : f32 from vector<1x1x1xf32>
      %cst_14 = arith.constant 3.81469727E-6 : f32
      %20 = arith.mulf %19, %cst_14 : f32
      %c0_15 = arith.constant 0 : index
      %c0_16 = arith.constant 0 : index
      %21 = memref.load %arg3[%c0_15, %c0_16] : memref<1x1xf32, #tpu.memory_space<smem>>
      memref.store %20, %arg3[%c0_15, %c0_16] : memref<1x1xf32, #tpu.memory_space<smem>>
    } else {
    }
    return
  }
  func.func @transform_0(%arg0: i32) -> (i32, i32) {
    %c0_i32 = arith.constant 0 : i32
    %c0_i32_0 = arith.constant 0 : i32
    return %c0_i32, %arg0 : i32, i32
  }
  func.func @transform_1(%arg0: i32) -> (i32, i32) {
    %c0_i32 = arith.constant 0 : i32
    %c0_i32_0 = arith.constant 0 : i32
    return %c0_i32, %arg0 : i32, i32
  }
  func.func @transform_2(%arg0: i32) -> (i32, i32) {
    %c0_i32 = arith.constant 0 : i32
    %c0_i32_0 = arith.constant 0 : i32
    %c0_i32_1 = arith.constant 0 : i32
    return %c0_i32, %c0_i32_0 : i32, i32
  }
}

</mosaic_0001>

<bundles_post_ra>
// kernel: tpu_custom_call.1
= control target key start
LH: loop header
LB: loop body
LE: loop exit
PB: predicated region body
PF: predicated region fallthrough
CT: control target
= control target key end

     0   :  { %7 = vsyncpa [#allocation4], 0  ;;  %s312_s0 = inlined_call_operand.hbm [shape: f32[8,256], index: 0, kind: input, shape index: {}]   ;;  %s313_s1 = inlined_call_operand.hbm [shape: f32[8,256], index: 1, kind: input, shape index: {}]   ;;  %s314_s2 = inlined_call_operand.hbm [shape: f32[1,1], index: 2, kind: output, shape index: {}]  }
   0x1   :  { %8 = vsyncpa [#allocation7], 0 }
   0x2   :  { %9 = vsyncpa [#allocation5], 0  ;;  %s284_s9 = smov [#allocation3]   ;;  %s285_s11 = smov [#allocation6]  }
   0x3   :  { %s16_s10 = sshll.u32 %s284_s9, 4  ;;  %s26_s12 = sshll.u32 %s285_s11, 4  ;;  %s17_s10 = int_to_ptr.vmem [resolvable:$true] %s16_s10  ;;  %s27_s12 = int_to_ptr.vmem [resolvable:$true] %s26_s12 }
   0x4   :  { %s238_s13 = scalar_lea.vmem %s17_s10, 256  ;;  %p243_p1 = scmp.lt.s32.totalorder %s17_s10, %s17_s10 }
   0x5   :  { %p239_p0 = scmp.ne.s32.totalorder %s17_s10, %s238_s13  ;;  %p244_p2 = scmp.lt.s32.totalorder %s238_s13, %s238_s13 }
   0x7   :  { %p245_p3 = por %p244_p2, %p243_p1 }
   0x9   :  { %p246_p4 = pnand %p245_p3, %p239_p0 }
   0xb   :  { %249 = shalt.err (!%p246_p4)
}
   0xc   :  { %19 = dma.hbm_to_vmem [thread:$0]  %s312_s0, 256, %s17_s10, [#allocation4]  }
   0xd   :  { %s258_s16 = scalar_lea.vmem %s27_s12, 256  ;;  %p263_p6 = scmp.lt.s32.totalorder %s27_s12, %s27_s12 }
   0xe   :  { %p259_p5 = scmp.ne.s32.totalorder %s27_s12, %s258_s16  ;;  %p264_p7 = scmp.lt.s32.totalorder %s258_s16, %s258_s16 }
  0x10   :  { %p265_p8 = por %p264_p7, %p263_p6 }
  0x12   :  { %p266_p9 = pnand %p265_p8, %p259_p5 }
  0x14   :  { %269 = shalt.err (!%p266_p9)
}
  0x15   :  { %29 = dma.hbm_to_vmem [thread:$0]  %s313_s1, 256, %s27_s12, [#allocation7]  }
  0x16   :  { %278 = dma.done.wait [#allocation4], 256  }
  0x17   :  { %279 = vsyncadd [#allocation4], 4294967040 }
  0x18   :  { %280 = dma.done.wait [#allocation7], 256  }
  0x19   :  { %281 = vsyncadd [#allocation7], 4294967040  ;;  %v43_v0 = vld [vmem:[#allocation3 + $0x8] sm:$0xff]  ;;  %v45_v1 = vld [vmem:[#allocation6 + $0x8] sm:$0xff]  ;;  %vm40_vm0 = vcmask 64512   ;;  %v286_v4 = vmov 0.0  }
  0x1a   :  { %v42_v2 = vld [vmem:[#allocation3] sm:$0xff]  ;;  %76 = vmatprep.subr.mxu0 %v43_v0  ;;  %146 = vmatprep.subr.mxu1 %v45_v1  ;;  %v44_v3 = vld [vmem:[#allocation6] sm:$0xff]  ;;  %41 = vst.msk [vmem:[#allocation2] sm:$0xff] %vm40_vm0, %v286_v4  ;;  %s287_s19 = smov [#allocation8]  }
  0x1b   :  { %77 = vmatpush1.xpose.msra.mxu0 %v42_v2  ;;  %147 = vmatpush1.xpose.msra.mxu1 %v44_v3 }
  0x1c   :  { %110 = vmatprep.mubr.f32.mxu0 %v43_v0  ;;  %180 = vmatprep.mubr.f32.mxu1 %v45_v1 }
  0x1e   :  { %111 = vmatmul.mubr.f32.vlgmr.msra.gmra.mxu0 %v42_v2  ;;  %181 = vmatmul.mubr.f32.vlgmr.msra.gmra.mxu1 %v44_v3 }
  0x21   :  { %v186_v7 = vld [vmem:[#allocation2] sm:$0xff] }
  0xde   :  { %v112_v5 = vpop.f32.mrf.mxu0  ;;  %v182_v6 = vpop.f32.mrf.mxu1 }
  0xdf   :  { %v187_v8 = vsub.f32 %v112_v5, %v182_v6 }
  0xe0   :  { %v114_v9 = vpop.f32.mrf.mxu0  ;;  %v184_v10 = vpop.f32.mrf.mxu1 }
  0xe1   :  { %v188_v11 = vadd.f32 %v187_v8, %v186_v7 }
  0xe3   :  { %190 = vst.msk [vmem:[#allocation2] sm:$0xff] %vm40_vm0, %v188_v11 }
  0xea   :  { %v194_v12 = vld [vmem:[#allocation2] sm:$0xff] }
  0xeb   :  { %v195_v13 = vand.u32 2147483647, %v194_v12 }
  0xed   :  { %v196_v14 = vsel %vm40_vm0, %v195_v13, 0.0 }
  0xee   :  { %197 = vadd.xlane.f32.xlu0 %v196_v14 }
 0x177   :  { %v198_v15 = vpop.xlane.xlu0 %197 }
 0x178   :  { %v199_v16 = vrot.slane %v198_v15, 4 }
 0x17a   :  { %v200_v17 = vadd.f32 %v199_v16, %v198_v15 }
 0x17c   :  { %v201_v18 = vrot.slane %v200_v17, 2 }
 0x17e   :  { %v202_v19 = vadd.f32 %v201_v18, %v200_v17 }
 0x180   :  { %v203_v20 = vrot.slane %v202_v19, 1 }
 0x182   :  { %v204_v21 = vadd.f32 %v203_v20, %v202_v19 }
 0x184   :  { %224 = vpush %v204_v21 }
 0x1b5   :  { %s225_s0 = spop %224 }
 0x1b6   :  { %s206_s1 = smul.f32 3.8146973e-06, %s225_s0 }
 0x1b8   :  { %208 = sst [smem:[#allocation8]] %s206_s1 }
 0x1b9   :  { %216 = dma.smem_to_hbm %s287_s19, 16, %s314_s2, [#allocation5]  }
 0x1ba   :  { %282 = dma.done.wait [#allocation5], 16  }
 0x1bb   :  { %283 = vsyncadd [#allocation5], 4294967280 }
 0x1bc   :  { %220 = sfence }
 0x1bd   :  { %221 = vsyncpa [#allocation4], 1 }
 0x1be   :  { %222 = vsyncpa [#allocation7], 1 }
 0x1bf   :  { %223 = vsyncpa [#allocation5], 1 }

</bundles_post_ra>
